<compile_context>
chip_gen: v7x
topology: tpu7x:2x2x1
jax: 0.10.0
libtpu: 0.0.40
codegen_flags: <defaults>
</compile_context>

<pallas_src>
import functools

import jax
import jax.numpy as jnp
from jax.experimental import pallas as pl
from jax.experimental.pallas import tpu as pltpu


def _round_up(x, m):
    return ((x + m - 1) // m) * m


def _cdiv(a, b):
    return -(-a // b)


# --------------------------------------------------------------------------
# Pallas kernel: folded conv front-end + MLP, one batch tile per grid step.
# --------------------------------------------------------------------------
def mlp_kernel(x_ref, w0_ref, wh1_ref, whs_ref, wrt_ref, bpack_ref, brcol_ref,
               o_ref, *, n_hidden, h0_dim, hidden):
    f32 = jnp.float32
    x = x_ref[...]                                          # (bt, F), compute dtype

    # folded qest + concat + conv1 (PyTorch flatten order baked into W0 / b0)
    h = jnp.tanh(jnp.dot(x, w0_ref[...], preferred_element_type=f32)
                 + bpack_ref[0:1, :h0_dim])                 # (bt, c*ip), f32

    # hidden1
    h = jnp.tanh(jnp.dot(h.astype(wh1_ref.dtype), wh1_ref[...],
                         preferred_element_type=f32)
                 + bpack_ref[1:2, :hidden])                 # (bt, hidden)

    # n extra hidden layers (static unroll, tiny)
    for i in range(n_hidden):
        h = jnp.tanh(jnp.dot(h.astype(whs_ref.dtype), whs_ref[i],
                             preferred_element_type=f32)
                     + bpack_ref[2 + i:3 + i, :hidden])

    # res layer, TRANSPOSED: (out_pad8, hidden) x (bt, hidden)^T -> (out_pad8, bt)
    # Batch lands on the lane axis -> lane-dense store of an 8-sublane block,
    # no 128-wide zero padding of the tiny output dim.
    out_t = jnp.tanh(
        jax.lax.dot_general(wrt_ref[...], h.astype(wrt_ref.dtype),
                            dimension_numbers=(((1,), (1,)), ((), ())),
                            preferred_element_type=f32)
        + brcol_ref[...])                                   # (out_pad8, bt)
    o_ref[...] = out_t.astype(o_ref.dtype)


# --------------------------------------------------------------------------
# Host-side parameter folding (zero runtime cost; exact, linear-only rewrite)
# --------------------------------------------------------------------------
def fold_params(raw, *, qd, nd, ip, n, compute_dtype=jnp.float32):
    c = raw['conv1_w'].shape[0]
    hidden = raw['h1_w'].shape[0]
    out_dim = raw['res_w'].shape[0]

    w1c = raw['conv1_w'][:, 0, :, 0]                        # (c, nd+1)
    wq = raw['qest_w']                                      # (ip, qd)
    bq = raw['qest_b']                                      # (ip,)
    b1 = raw['conv1_b']                                     # (c,)

    # W0[k,           o*ip + w] = wq[w, k] * w1c[o, nd]          (k < qd, qest row)
    # W0[qd + h*ip+v, o*ip + w] = w1c[o, h] * (v == w)           (h < nd, image rows)
    # b0[o*ip + w]              = b1[o] + bq[w] * w1c[o, nd]
    w0_q = jnp.einsum('kw,o->kow', wq.T, w1c[:, nd]).reshape(qd, c * ip)
    eye = jnp.eye(ip, dtype=jnp.float32)
    w0_img = jnp.einsum('oh,vw->hvow', w1c[:, :nd], eye).reshape(nd * ip, c * ip)
    w0 = jnp.concatenate([w0_q, w0_img], axis=0)            # (qd + nd*ip, c*ip)
    b0 = (b1[:, None] + bq[None, :] * w1c[:, nd][:, None]).reshape(c * ip)

    wh1 = raw['h1_w'].T                                     # (c*ip, hidden)
    if n > 0:
        whs = jnp.transpose(raw['hs_w'], (0, 2, 1))         # (n, hidden, hidden)
        bhs = raw['hs_b']                                   # (n, hidden)
    else:
        whs = jnp.zeros((1, hidden, hidden), jnp.float32)   # dummy, never read
        bhs = jnp.zeros((0, hidden), jnp.float32)

    # res layer stored TRANSPOSED, rows padded only to the 8-sublane minimum.
    out_pad8 = _round_up(out_dim, 8)
    wrt = jnp.zeros((out_pad8, hidden), jnp.float32).at[:out_dim, :].set(raw['res_w'])
    brcol = jnp.zeros((out_pad8, 1), jnp.float32).at[:out_dim, 0].set(raw['res_b'])

    # pack all row-vector biases into one buffer (fewer tiny DMAs); stays f32
    bias_w = max(c * ip, hidden)
    bpack = jnp.zeros((n + 2, bias_w), jnp.float32)
    bpack = bpack.at[0, :c * ip].set(b0)
    bpack = bpack.at[1, :hidden].set(raw['h1_b'])
    for i in range(n):
        bpack = bpack.at[2 + i, :hidden].set(bhs[i])

    cdt = compute_dtype                                     # MXU operand dtype
    return dict(w0=w0.astype(cdt), wh1=wh1.astype(cdt), whs=whs.astype(cdt),
                wrt=wrt.astype(cdt), bpack=bpack, brcol=brcol,
                out_dim=out_dim, out_pad8=out_pad8)


# --------------------------------------------------------------------------
# Batch-tile selection (adaptive, v7x-aware)
# --------------------------------------------------------------------------
_SPLIT_THRESHOLD = 256   # force >=2 grid steps (v7x two-TC sharding) above this


def _choose_tile(B, max_batch_tile):
    num = _cdiv(B, max_batch_tile)
    if num < 2 and B >= _SPLIT_THRESHOLD:
        num = 2                                   # keep both v7x TensorCores busy
    if num == 1:
        bt = _round_up(B, 8)                      # single tile: block == full array
    else:
        # multi-tile: lane axis of the transposed output block needs 128-alignment
        bt = _round_up(_cdiv(B, num), 128)
        num = _cdiv(B, bt)
    return bt, bt * num


# --------------------------------------------------------------------------
# Host wrapper: batch grid, resident weights, transposed lane-dense output
# --------------------------------------------------------------------------
def linear_conv_qest_driver_forward(x, folded, *, n_hidden, max_batch_tile=2048):
    # x: (B, 1, qd + nd*ip) exactly as the PyTorch module expects.
    assert x.ndim == 3 and x.shape[1] == 1, x.shape
    B = x.shape[0]
    x2d = x[:, 0, :]                                        # glue: squeeze driver dim
    F = x2d.shape[1]

    w0, wh1, whs, wrt, bpack, brcol = (folded['w0'], folded['wh1'], folded['whs'],
                                       folded['wrt'], folded['bpack'], folded['brcol'])
    assert F == w0.shape[0], "input last dim must equal qest_size + nd*ip"
    h0_dim = w0.shape[1]
    hidden = wh1.shape[1]
    out_dim = folded['out_dim']
    out_pad8 = folded['out_pad8']

    x2d = x2d.astype(w0.dtype)                              # bf16 or f32 compute path

    bt, b_pad = _choose_tile(B, max_batch_tile)
    if b_pad != B:
        x2d = jnp.pad(x2d, ((0, b_pad - B), (0, 0)))

    kernel = functools.partial(mlp_kernel, n_hidden=n_hidden,
                               h0_dim=h0_dim, hidden=hidden)

    weight_bytes = sum(int(a.size) * a.dtype.itemsize
                       for a in (w0, wh1, whs, wrt, bpack, brcol))
    cost = pl.CostEstimate(
        flops=int(2 * b_pad * (F * h0_dim + h0_dim * hidden
                               + n_hidden * hidden * hidden + hidden * out_pad8)),
        transcendentals=int(b_pad * (h0_dim + (n_hidden + 1) * hidden + out_pad8)),
        bytes_accessed=int(b_pad * (F * x2d.dtype.itemsize + out_pad8 * 4)
                           + weight_bytes),
    )

    out_t = pl.pallas_call(
        kernel,
        out_shape=jax.ShapeDtypeStruct((out_pad8, b_pad), jnp.float32),
        grid=(b_pad // bt,),
        in_specs=[
            pl.BlockSpec((bt, F), lambda i: (i, 0)),        # activations: batch-tiled
            pl.BlockSpec(w0.shape, lambda i: (0, 0)),       # weights: VMEM-resident
            pl.BlockSpec(wh1.shape, lambda i: (0, 0)),
            pl.BlockSpec(whs.shape, lambda i: (0, 0, 0)),
            pl.BlockSpec(wrt.shape, lambda i: (0, 0)),
            pl.BlockSpec(bpack.shape, lambda i: (0, 0)),
            pl.BlockSpec(brcol.shape, lambda i: (0, 0)),
        ],
        out_specs=pl.BlockSpec((out_pad8, bt), lambda i: (0, i)),   # batch on lanes
        compiler_params=pltpu.CompilerParams(
            dimension_semantics=("parallel",)),
        cost_estimate=cost,
    )(x2d, w0, wh1, whs, wrt, bpack, brcol)

    # tiny host-side cleanup: drop padded rows/lanes, restore (B, out_dim)
    return out_t[:out_dim, :B].T


# --------------------------------------------------------------------------
# Pure-JAX reference mirroring the PyTorch forward op-by-op (for validation)
# --------------------------------------------------------------------------
def reference_forward(x, raw, *, qd, nd, ip, n):
    B = x.shape[0]
    p = x[:, 0, :qd]                                        # (B, qd)
    xi = x[:, 0, qd:].reshape(B, nd, ip)                    # (B, nd, ip)
    ph = p @ raw['qest_w'].T + raw['qest_b']                # (B, ip)   no activation
    img = jnp.concatenate([xi, ph[:, None, :]], axis=1)     # (B, nd+1, ip)
    w1c = raw['conv1_w'][:, 0, :, 0]                        # (c, nd+1)
    conv = jnp.einsum('oh,bhw->bow', w1c, img) + raw['conv1_b'][None, :, None]
    h = jnp.tanh(conv).reshape(B, -1)                       # (B, c*ip), idx = o*ip + w
    h = jnp.tanh(h @ raw['h1_w'].T + raw['h1_b'])
    for i in range(n):
        h = jnp.tanh(h @ raw['hs_w'][i].T + raw['hs_b'][i])
    return jnp.tanh(h @ raw['res_w'].T + raw['res_b'])


# --------------------------------------------------------------------------
# Deterministic synthetic parameter init (matches nn module shapes)
# --------------------------------------------------------------------------
def init_raw_params(key, *, c, nd, ip, qd, hidden, n, out_dim):
    keys = jax.random.split(key, 12)

    def unif(k, shape, fan_in):
        bound = 1.0 / (float(fan_in) ** 0.5)
        return jax.random.uniform(k, shape, jnp.float32, -bound, bound)

    return {
        'qest_w': unif(keys[0], (ip, qd), qd),              # Linear(qd -> ip)
        'qest_b': unif(keys[1], (ip,), qd),
        'conv1_w': unif(keys[2], (c, 1, nd + 1, 1), nd + 1),  # Conv2d(1, c, (nd+1, 1))
        'conv1_b': unif(keys[3], (c,), nd + 1),
        'h1_w': unif(keys[4], (hidden, c * ip), c * ip),    # Linear(c*ip -> hidden)
        'h1_b': unif(keys[5], (hidden,), c * ip),
        'hs_w': (unif(keys[6], (n, hidden, hidden), hidden)
                 if n > 0 else jnp.zeros((0, hidden, hidden), jnp.float32)),
        'hs_b': (unif(keys[7], (n, hidden), hidden)
                 if n > 0 else jnp.zeros((0, hidden), jnp.float32)),
        'res_w': unif(keys[8], (out_dim, hidden), hidden),  # Linear(hidden -> out)
        'res_b': unif(keys[9], (out_dim,), hidden),
    }


if __name__ == "__main__":
    # small hyperparameters consistent with the module's view() algebra
    B = 2
    conv_number = 4
    number_of_drivers = 8
    input_size = 8
    qest_size = 8
    hidden_size = 32
    n = 2
    output_dim = 3
    F = qest_size + number_of_drivers * input_size          # 72

    key = jax.random.PRNGKey(0)
    kx, kx2, kw = jax.random.split(key, 3)
    raw = init_raw_params(kw, c=conv_number, nd=number_of_drivers,
                          ip=input_size, qd=qest_size, hidden=hidden_size,
                          n=n, out_dim=output_dim)

    # --- f32 path, tiny batch (single-tile grid), exact check ---------------
    folded_f32 = fold_params(raw, qd=qest_size, nd=number_of_drivers,
                             ip=input_size, n=n, compute_dtype=jnp.float32)
    x = jax.random.normal(kx, (B, 1, F), jnp.float32)
    out = linear_conv_qest_driver_forward(x, folded_f32, n_hidden=n)
    out = jax.block_until_ready(out)
    ref = reference_forward(x, raw, qd=qest_size, nd=number_of_drivers,
                            ip=input_size, n=n)
    assert out.shape == (B, output_dim), out.shape
    assert jnp.allclose(out, ref, atol=1e-4, rtol=1e-4), \
        float(jnp.max(jnp.abs(out - ref)))

    # --- bf16 path, larger batch (2-tile grid, padded last tile) ------------
    B2 = 300
    folded_bf16 = fold_params(raw, qd=qest_size, nd=number_of_drivers,
                              ip=input_size, n=n, compute_dtype=jnp.bfloat16)
    x2 = jax.random.normal(kx2, (B2, 1, F), jnp.float32)
    out2 = linear_conv_qest_driver_forward(x2, folded_bf16, n_hidden=n)
    out2 = jax.block_until_ready(out2)
    ref2 = reference_forward(x2, raw, qd=qest_size, nd=number_of_drivers,
                             ip=input_size, n=n)
    assert out2.shape == (B2, output_dim), out2.shape
    assert jnp.allclose(out2, ref2, atol=5e-2, rtol=5e-2), \
        float(jnp.max(jnp.abs(out2 - ref2)))

    print("KERNEL_OK")
</pallas_src>

<mosaic_0001>
module attributes {stable_mosaic.version = 11 : i64} {
  func.func @mlp_kernel(%arg0: i32, %arg1: memref<8x72xf32, #tpu.memory_space<vmem>>, %arg2: memref<72x32xf32, #tpu.memory_space<vmem>>, %arg3: memref<32x32xf32, #tpu.memory_space<vmem>>, %arg4: memref<2x32x32xf32, #tpu.memory_space<vmem>>, %arg5: memref<8x32xf32, #tpu.memory_space<vmem>>, %arg6: memref<4x32xf32, #tpu.memory_space<vmem>>, %arg7: memref<8x1xf32, #tpu.memory_space<vmem>>, %arg8: memref<8x8xf32, #tpu.memory_space<vmem>>) attributes {dimension_semantics = [#tpu.dimension_semantics<parallel>], iteration_bounds = array<i64: 1>, scalar_prefetch = 0 : i64, scratch_operands = 0 : i64, tpu.core_type = #tpu.core_type<tc>, window_params = [{transform_indices = @transform_0, window_bounds = array<i64: 8, 72>}, {pipeline_mode = #tpu.pipeline_mode<synchronous>, transform_indices = @transform_1, window_bounds = array<i64: 72, 32>}, {pipeline_mode = #tpu.pipeline_mode<synchronous>, transform_indices = @transform_2, window_bounds = array<i64: 32, 32>}, {pipeline_mode = #tpu.pipeline_mode<synchronous>, transform_indices = @transform_3, window_bounds = array<i64: 2, 32, 32>}, {pipeline_mode = #tpu.pipeline_mode<synchronous>, transform_indices = @transform_4, window_bounds = array<i64: 8, 32>}, {pipeline_mode = #tpu.pipeline_mode<synchronous>, transform_indices = @transform_5, window_bounds = array<i64: 4, 32>}, {pipeline_mode = #tpu.pipeline_mode<synchronous>, transform_indices = @transform_6, window_bounds = array<i64: 8, 1>}, {transform_indices = @transform_7, window_bounds = array<i64: 8, 8>}]} {
    %c0 = arith.constant 0 : index
    %c0_0 = arith.constant 0 : index
    %0 = vector.load %arg1[%c0, %c0_0] : memref<8x72xf32, #tpu.memory_space<vmem>>, vector<8x72xf32>
    %c0_1 = arith.constant 0 : index
    %c0_2 = arith.constant 0 : index
    %1 = vector.load %arg2[%c0_1, %c0_2] : memref<72x32xf32, #tpu.memory_space<vmem>>, vector<72x32xf32>
    %cst = arith.constant dense<0.000000e+00> : vector<8x32xf32>
    %2 = tpu.matmul %0, %1, %cst {dimension_numbers = #tpu.dot_dimension_numbers<[1], [0], [0], [1], [0, 0, 1, 1], [], []>} : vector<8x72xf32>, vector<72x32xf32>, vector<8x32xf32> -> vector<8x32xf32>
    %c0_3 = arith.constant 0 : index
    %c0_4 = arith.constant 0 : index
    %3 = vector.load %arg6[%c0_3, %c0_4] : memref<4x32xf32, #tpu.memory_space<vmem>>, vector<1x32xf32>
    %4 = vector.broadcast %3 : vector<1x32xf32> to vector<8x32xf32>
    %5 = arith.addf %2, %4 : vector<8x32xf32>
    %6 = math.tanh %5 : vector<8x32xf32>
    %c0_5 = arith.constant 0 : index
    %c0_6 = arith.constant 0 : index
    %7 = vector.load %arg3[%c0_5, %c0_6] : memref<32x32xf32, #tpu.memory_space<vmem>>, vector<32x32xf32>
    %cst_7 = arith.constant dense<0.000000e+00> : vector<8x32xf32>
    %8 = tpu.matmul %6, %7, %cst_7 {dimension_numbers = #tpu.dot_dimension_numbers<[1], [0], [0], [1], [0, 0, 1, 1], [], []>} : vector<8x32xf32>, vector<32x32xf32>, vector<8x32xf32> -> vector<8x32xf32>
    %c1 = arith.constant 1 : index
    %c0_8 = arith.constant 0 : index
    %9 = vector.load %arg6[%c1, %c0_8] : memref<4x32xf32, #tpu.memory_space<vmem>>, vector<1x32xf32>
    %10 = vector.broadcast %9 : vector<1x32xf32> to vector<8x32xf32>
    %11 = arith.addf %8, %10 : vector<8x32xf32>
    %12 = math.tanh %11 : vector<8x32xf32>
    %c0_9 = arith.constant 0 : index
    %c0_10 = arith.constant 0 : index
    %c0_11 = arith.constant 0 : index
    %13 = vector.load %arg4[%c0_9, %c0_10, %c0_11] : memref<2x32x32xf32, #tpu.memory_space<vmem>>, vector<1x32x32xf32>
    %14 = vector.shape_cast %13 : vector<1x32x32xf32> to vector<32x32xf32>
    %cst_12 = arith.constant dense<0.000000e+00> : vector<8x32xf32>
    %15 = tpu.matmul %12, %14, %cst_12 {dimension_numbers = #tpu.dot_dimension_numbers<[1], [0], [0], [1], [0, 0, 1, 1], [], []>} : vector<8x32xf32>, vector<32x32xf32>, vector<8x32xf32> -> vector<8x32xf32>
    %c2 = arith.constant 2 : index
    %c0_13 = arith.constant 0 : index
    %16 = vector.load %arg6[%c2, %c0_13] : memref<4x32xf32, #tpu.memory_space<vmem>>, vector<1x32xf32>
    %17 = vector.broadcast %16 : vector<1x32xf32> to vector<8x32xf32>
    %18 = arith.addf %15, %17 : vector<8x32xf32>
    %19 = math.tanh %18 : vector<8x32xf32>
    %c1_14 = arith.constant 1 : index
    %c0_15 = arith.constant 0 : index
    %c0_16 = arith.constant 0 : index
    %20 = vector.load %arg4[%c1_14, %c0_15, %c0_16] : memref<2x32x32xf32, #tpu.memory_space<vmem>>, vector<1x32x32xf32>
    %21 = vector.shape_cast %20 : vector<1x32x32xf32> to vector<32x32xf32>
    %cst_17 = arith.constant dense<0.000000e+00> : vector<8x32xf32>
    %22 = tpu.matmul %19, %21, %cst_17 {dimension_numbers = #tpu.dot_dimension_numbers<[1], [0], [0], [1], [0, 0, 1, 1], [], []>} : vector<8x32xf32>, vector<32x32xf32>, vector<8x32xf32> -> vector<8x32xf32>
    %c3 = arith.constant 3 : index
    %c0_18 = arith.constant 0 : index
    %23 = vector.load %arg6[%c3, %c0_18] : memref<4x32xf32, #tpu.memory_space<vmem>>, vector<1x32xf32>
    %24 = vector.broadcast %23 : vector<1x32xf32> to vector<8x32xf32>
    %25 = arith.addf %22, %24 : vector<8x32xf32>
    %26 = math.tanh %25 : vector<8x32xf32>
    %c0_19 = arith.constant 0 : index
    %c0_20 = arith.constant 0 : index
    %27 = vector.load %arg5[%c0_19, %c0_20] : memref<8x32xf32, #tpu.memory_space<vmem>>, vector<8x32xf32>
    %cst_21 = arith.constant dense<0.000000e+00> : vector<8x8xf32>
    %28 = tpu.matmul %27, %26, %cst_21 {dimension_numbers = #tpu.dot_dimension_numbers<[1], [1], [0], [0], [0, 0, 1, 0], [], []>} : vector<8x32xf32>, vector<8x32xf32>, vector<8x8xf32> -> vector<8x8xf32>
    %c0_22 = arith.constant 0 : index
    %c0_23 = arith.constant 0 : index
    %29 = vector.load %arg7[%c0_22, %c0_23] : memref<8x1xf32, #tpu.memory_space<vmem>>, vector<8x1xf32>
    %30 = vector.broadcast %29 : vector<8x1xf32> to vector<8x8xf32>
    %31 = arith.addf %28, %30 : vector<8x8xf32>
    %32 = math.tanh %31 : vector<8x8xf32>
    %c0_24 = arith.constant 0 : index
    %c0_25 = arith.constant 0 : index
    %33 = vector.load %arg8[%c0_24, %c0_25] : memref<8x8xf32, #tpu.memory_space<vmem>>, vector<8x8xf32>
    tpu.vector_store %arg8[%c0_24, %c0_25], %32 {strides = array<i32>} : memref<8x8xf32, #tpu.memory_space<vmem>>, vector<8x8xf32>,
    return
  }
  func.func @transform_0(%arg0: i32) -> (i32, i32) {
    %c0_i32 = arith.constant 0 : i32
    %c0_i32_0 = arith.constant 0 : i32
    return %arg0, %c0_i32 : i32, i32
  }
  func.func @transform_1(%arg0: i32) -> (i32, i32) {
    %c0_i32 = arith.constant 0 : i32
    %c0_i32_0 = arith.constant 0 : i32
    %c0_i32_1 = arith.constant 0 : i32
    return %c0_i32, %c0_i32_0 : i32, i32
  }
  func.func @transform_2(%arg0: i32) -> (i32, i32) {
    %c0_i32 = arith.constant 0 : i32
    %c0_i32_0 = arith.constant 0 : i32
    %c0_i32_1 = arith.constant 0 : i32
    return %c0_i32, %c0_i32_0 : i32, i32
  }
  func.func @transform_3(%arg0: i32) -> (i32, i32, i32) {
    %c0_i32 = arith.constant 0 : i32
    %c0_i32_0 = arith.constant 0 : i32
    %c0_i32_1 = arith.constant 0 : i32
    %c0_i32_2 = arith.constant 0 : i32
    return %c0_i32, %c0_i32_0, %c0_i32_1 : i32, i32, i32
  }
  func.func @transform_4(%arg0: i32) -> (i32, i32) {
    %c0_i32 = arith.constant 0 : i32
    %c0_i32_0 = arith.constant 0 : i32
    %c0_i32_1 = arith.constant 0 : i32
    return %c0_i32, %c0_i32_0 : i32, i32
  }
  func.func @transform_5(%arg0: i32) -> (i32, i32) {
    %c0_i32 = arith.constant 0 : i32
    %c0_i32_0 = arith.constant 0 : i32
    %c0_i32_1 = arith.constant 0 : i32
    return %c0_i32, %c0_i32_0 : i32, i32
  }
  func.func @transform_6(%arg0: i32) -> (i32, i32) {
    %c0_i32 = arith.constant 0 : i32
    %c0_i32_0 = arith.constant 0 : i32
    %c0_i32_1 = arith.constant 0 : i32
    return %c0_i32, %c0_i32_0 : i32, i32
  }
  func.func @transform_7(%arg0: i32) -> (i32, i32) {
    %c0_i32 = arith.constant 0 : i32
    %c0_i32_0 = arith.constant 0 : i32
    return %c0_i32, %arg0 : i32, i32
  }
}

</mosaic_0001>

<bundles_post_ra>
// kernel: tpu_custom_call.1
= control target key start
LH: loop header
LB: loop body
LE: loop exit
PB: predicated region body
PF: predicated region fallthrough
CT: control target
= control target key end

     0   :  { %v638_v3 = vmov 0.0|0.0   ;;  %vm639_vm0 = vmmov 0   ;;  %v640_v6 = vmov 0.0   ;;  %s806_s0 = inlined_call_operand.vmem [shape: f32[8,72], index: 0, kind: input, shape index: {}]   ;;  %s807_s1 = inlined_call_operand.vmem [shape: f32[72,32], index: 1, kind: input, shape index: {}]   ;;  %s808_s2 = inlined_call_operand.vmem [shape: f32[32,32], index: 2, kind: input, shape index: {}]   ;;  %s809_s3 = inlined_call_operand.vmem [shape: f32[2,32,32], index: 3, kind: input, shape index: {}]   ;;  %s810_s4 = inlined_call_operand.vmem [shape: f32[8,32], index: 4, kind: input, shape index: {}]   ;;  %s811_s5 = inlined_call_operand.vmem [shape: f32[4,32], index: 5, kind: input, shape index: {}]   ;;  %s812_s6 = inlined_call_operand.vmem [shape: f32[8,1], index: 6, kind: input, shape index: {}]   ;;  %s813_s7 = inlined_call_operand.hbm [shape: f32[8,8], index: 7, kind: output, shape index: {}]  }
   0x1   :  { %v28_v0 = vld [vmem:[%s807_s1] sm:$0xff]  ;;  %v29_v1 = vld [vmem:[%s807_s1 + $0x8] sm:$0xff]  ;;  %v30_v2 = vld [vmem:[%s807_s1 + $0x10] sm:$0xff]  ;;  %568 = vmatprep.subr.bf16.mxu0 %v638_v3  ;;  %527 = vmatprep.mubr.msk.f32.mxu0 %vm639_vm0, %v640_v6 }
   0x2   :  { %v569_v4 = vpack.c.bf16 %v29_v1, %v28_v0  ;;  %v31_v5 = vld [vmem:[%s807_s1 + $0x18] sm:$0xff]  ;;  %580 = vmatprep.subr.bf16.mxu1 %v638_v3  ;;  %538 = vmatprep.mubr.msk.f32.mxu1 %vm639_vm0, %v640_v6 }
   0x3   :  { %v572_v7 = vpack.c.bf16 %v31_v5, %v30_v2 }
   0x4   :  { %570 = vmatpush3.bf16.msra.mxu0 %v569_v4 }
   0x5   :  { %12 = vsyncpa [#allocation3], 0  ;;  %571 = vmatprep.subr.bf16.mxu0 %v638_v3  ;;  %v32_v8 = vld [vmem:[%s807_s1 + $0x20] sm:$0xff]  ;;  %v33_v9 = vld [vmem:[%s807_s1 + $0x28] sm:$0xff]  ;;  %vm42_vm1 = vcmask 588800   ;;  %vm126_vm2 = vcmask 261120  }
   0x6   :  { %v575_v10 = vpack.c.bf16 %v33_v9, %v32_v8  ;;  %v34_v11 = vld [vmem:[%s807_s1 + $0x30] sm:$0xff]  ;;  %v35_v12 = vld [vmem:[%s807_s1 + $0x38] sm:$0xff]  ;;  %v36_v14 = vld [vmem:[%s807_s1 + $0x40] sm:$0xff]  ;;  %v641_v50 = vmov 0   ;;  %vm452_vm3 = vcmask 64512  }
   0x7   :  { %v578_v13 = vpack.c.bf16 %v35_v12, %v34_v11  ;;  %v27_v15 = vld [vmem:[%s806_s0] sm:$0xff]  ;;  %v118_v17 = vld [vmem:[%s808_s2 + $0x8] sm:$0xff]  ;;  %v119_v18 = vld [vmem:[%s808_s2 + $0x10] sm:$0xff]  ;;  %603 = vset.pattern.permute.xlu0 %v641_v50 }
   0x8   :  { %573 = vmatpush3.bf16.msra.mxu0 %v572_v7  ;;  %v117_v16 = vld [vmem:[%s808_s2] sm:$0xff]  ;;  %v120_v20 = vld [vmem:[%s808_s2 + $0x18] sm:$0xff]  ;;  %v202_v28 = vld [vmem:[%s809_s3 + $0x8] sm:$0xff] }
   0x9   :  { %574 = vmatprep.subr.bf16.mxu0 %v638_v3  ;;  %v581_v19 = vpack.c.bf16 %v118_v17, %v117_v16  ;;  %v584_v21 = vpack.c.bf16 %v120_v20, %v119_v18  ;;  %v468_v22 = vld [vmem:[%s811_s5] ss:$0 sm:$0xff]  ;;  %v203_v29 = vld [vmem:[%s809_s3 + $0x10] sm:$0xff]  ;;  %v204_v31 = vld [vmem:[%s809_s3 + $0x18] sm:$0xff] }
   0xa   :  { %v201_v27 = vld [vmem:[%s809_s3] sm:$0xff]  ;;  %v590_v32 = vpack.c.bf16 %v204_v31, %v203_v29  ;;  %v475_v39 = vld [vmem:[%s809_s3 + $0x28] sm:$0xff]  ;;  %v476_v40 = vld [vmem:[%s809_s3 + $0x30] sm:$0xff] }
   0xb   :  { %582 = vmatpush3.bf16.msra.mxu1 %v581_v19  ;;  %v587_v30 = vpack.c.bf16 %v202_v28, %v201_v27  ;;  %v470_v33 = vld [vmem:[%s811_s5 + $0x1] ss:$0 sm:$0xff]  ;;  %v477_v42 = vld [vmem:[%s809_s3 + $0x38] sm:$0xff]  ;;  %v472_v44 = vld [vmem:[%s811_s5 + $0x2] ss:$0 sm:$0xff] }
   0xc   :  { %576 = vmatpush3.bf16.msra.mxu0 %v575_v10  ;;  %583 = vmatprep.subr.bf16.mxu1 %v638_v3  ;;  %v474_v38 = vld [vmem:[%s809_s3 + $0x20] sm:$0xff]  ;;  %v596_v43 = vpack.c.bf16 %v477_v42, %v476_v40 }
   0xd   :  { %577 = vmatprep.subr.bf16.mxu0 %v638_v3  ;;  %v593_v41 = vpack.c.bf16 %v475_v39, %v474_v38  ;;  %v369_v49 = vld [vmem:[%s812_s6] sm:$0xff]  ;;  %s642_s6 = smov [#allocation2]  }
   0xe   :  { %372 = vperm.xlu0 %603, %v369_v49   ;;  %v478_v51 = vld [vmem:[%s811_s5 + $0x3] ss:$0 sm:$0xff]  ;;  %s460_s5 = sshll.u32 %s642_s6, 4  ;;  %s461_s5 = int_to_ptr.vmem [resolvable:$true] %s460_s5 }
   0xf   :  { %585 = vmatpush3.bf16.msra.mxu1 %v584_v21  ;;  %v368_v56 = vld [vmem:[%s810_s4] sm:$0xff]  ;;  %s614_s28 = scalar_lea.vmem %s461_s5, 128  ;;  %p619_p1 = scmp.lt.s32.totalorder %s461_s5, %s461_s5 }
  0x10   :  { %579 = vmatpush3.bf16.msra.mxu0 %v578_v13  ;;  %586 = vmatprep.subr.bf16.mxu1 %v638_v3  ;;  %p615_p0 = scmp.ne.s32.totalorder %s461_s5, %s614_s28  ;;  %p620_p2 = scmp.lt.s32.totalorder %s614_s28, %s614_s28 }
  0x11   :  { %525 = vmatprep.subr.mxu0 %v640_v6 }
  0x12   :  { %p621_p3 = por %p620_p2, %p619_p1 }
  0x14   :  { %526 = vmatpush3.msra.mxu0 %v36_v14  ;;  %p622_p4 = pnand %p621_p3, %p615_p0 }
  0x15   :  { %528 = vmatmul.mubr.msk.f32.vlgmr.msra.gmra.mrb[0].mxu0 %vm42_vm1, %v27_v15  ;;  %563 = vmatprep.subr.mxu0 %v640_v6 }
  0x16   :  { %565 = vmatprep.mubr.msk.f32.mxu0 %vm639_vm0, %v640_v6 }
  0x8d   :  { %v373_v57 = vpop.permute.xlu0 %372 }
  0xe8   :  { %v112_v23 = vpop.f32.mrb[0].mxu0 }
  0xe9   :  { %v113_v24 = vadd.f32 %v468_v22, %v112_v23  ;;  %v529_v25 = vpop.f32.mrb[1].mxu0 }
  0xeb   :  { %604 = vtanh.f32 %v113_v24 }
  0xf5   :  { %v605_v26 = vpop.eup %604 }
  0xf6   :  { %539 = vmatmul.mubr.msk.f32.vlgmr.msra.gmra.mrb[0].mxu1 %vm126_vm2, %v605_v26 }
  0xf7   :  { %549 = vmatprep.mubr.msk.f32.mxu1 %vm639_vm0, %v640_v6  ;;  %588 = vmatpush3.bf16.msra.mxu1 %v587_v30 }
  0xf8   :  { %589 = vmatprep.subr.bf16.mxu1 %v638_v3 }
  0xfb   :  { %591 = vmatpush3.bf16.msra.mxu1 %v590_v32 }
  0xfc   :  { %592 = vmatprep.subr.bf16.mxu1 %v638_v3 }
 0x1c9   :  { %v196_v34 = vpop.f32.mrb[0].mxu1 }
 0x1ca   :  { %v197_v35 = vadd.f32 %v470_v33, %v196_v34  ;;  %v540_v36 = vpop.f32.mrb[1].mxu1 }
 0x1cc   :  { %606 = vtanh.f32 %v197_v35 }
 0x1d6   :  { %v607_v37 = vpop.eup %606 }
 0x1d7   :  { %550 = vmatmul.mubr.msk.f32.vlgmr.msra.gmra.mrb[2].mxu1 %vm126_vm2, %v607_v37 }
 0x1d8   :  { %560 = vmatprep.mubr.msk.f32.mxu1 %vm639_vm0, %v640_v6  ;;  %594 = vmatpush3.bf16.msra.mxu1 %v593_v41 }
 0x1d9   :  { %595 = vmatprep.subr.bf16.mxu1 %v638_v3 }
 0x1dc   :  { %597 = vmatpush3.bf16.msra.mxu1 %v596_v43 }
 0x2aa   :  { %v279_v45 = vpop.f32.mrb[2].mxu1 }
 0x2ab   :  { %v280_v46 = vadd.f32 %v472_v44, %v279_v45  ;;  %v551_v47 = vpop.f32.mrb[3].mxu1 }
 0x2ad   :  { %608 = vtanh.f32 %v280_v46 }
 0x2b7   :  { %v609_v48 = vpop.eup %608 }
 0x2b8   :  { %561 = vmatmul.mubr.msk.f32.vlgmr.msra.gmra.mrb[4].mxu1 %vm126_vm2, %v609_v48 }
 0x38b   :  { %v363_v52 = vpop.f32.mrb[4].mxu1 }
 0x38c   :  { %v364_v53 = vadd.f32 %v478_v51, %v363_v52  ;;  %v562_v54 = vpop.f32.mrb[5].mxu1 }
 0x38e   :  { %610 = vtanh.f32 %v364_v53 }
 0x398   :  { %v611_v55 = vpop.eup %610 }
 0x399   :  { %564 = vmatpush3.xpose.msk.msra.mxu0 %vm126_vm2, %v611_v55 }
 0x39c   :  { %566 = vmatmul.mubr.msk.f32.vlgmr.msra.gmra.mrb[2].mxu0 %vm126_vm2, %v368_v56 }
 0x46f   :  { %v447_v58 = vpop.f32.mrb[2].mxu0 }
 0x470   :  { %v448_v59 = vadd.f32 %v447_v58, %v373_v57  ;;  %v567_v60 = vpop.f32.mrb[3].mxu0 }
 0x472   :  { %612 = vtanh.f32 %v448_v59 }
 0x47c   :  { %v613_v61 = vpop.eup %612 }
 0x47d   :  { %453 = vst.msk [vmem:[#allocation2] sm:$0xff] %vm452_vm3, %v613_v61 }
 0x47e   :  { %625 = shalt.err (!%p622_p4)
}
 0x47f   :  { %s626_s29 = scalar_lea.hbm %s813_s7, 128 }
 0x480   :  { %p627_p5 = scmp.ne.s32.totalorder %s813_s7, %s626_s29  ;;  %p630_p6 = scmp.lt.u32.totalorder %s626_s29, %s813_s7 }
 0x482   :  { %p632_p7 = pnand %p630_p6, %p627_p5 }
 0x484   :  { %635 = shalt.err (!%p632_p7)
}
 0x485   :  { %463 = dma.vmem_to_hbm [thread:$0]  %s461_s5, 128, %s813_s7, [#allocation3]  }
 0x486   :  { %636 = dma.done.wait [#allocation3], 128  }
 0x487   :  { %637 = vsyncadd [#allocation3], 4294967168 }
 0x488   :  { %467 = vsyncpa [#allocation3], 1 }

</bundles_post_ra>
